<compile_context>
chip_gen: v7x
topology: tpu7x:2x2x1
jax: 0.10.0
libtpu: 0.0.40
codegen_flags: <defaults>
</compile_context>

<pallas_src>
import jax
import jax.numpy as jnp
from jax import lax
from jax.experimental import pallas as pl
from jax.experimental.pallas import tpu as pltpu


# --------------------------------------------------------------------------
# Kernels
# --------------------------------------------------------------------------
def _mean_kernel(x_ref, wt_ref, b_ref, mean_ref):
    # mean = x @ Wt + b ; Wt is the pre-transposed (K, N) weight, so the MXU is
    # fed in canonical (lhs last-dim contracting, rhs first-dim contracting)
    # orientation with no in-kernel relayout of W.
    acc = jnp.dot(x_ref[...], wt_ref[...], preferred_element_type=jnp.float32)
    mean_ref[...] = (acc + b_ref[...].astype(jnp.float32)).astype(mean_ref.dtype)


def _mean_t_kernel(x_ref, w_ref, b_ref, mean_t_ref):
    # mean^T = W @ x^T ; output block is (N, TM) so the last (lane) dim is the
    # batch tile -> lane-dense, unmasked stores when TM is a multiple of 128.
    acc = lax.dot_general(
        w_ref[...], x_ref[...],
        dimension_numbers=(((1,), (1,)), ((), ())),
        preferred_element_type=jnp.float32,
    )
    mean_t_ref[...] = (acc + b_ref[...].astype(jnp.float32)).astype(mean_t_ref.dtype)


# --------------------------------------------------------------------------
# Tiling / budget helpers
# --------------------------------------------------------------------------
def _round_up(v, m):
    return -(-v // m) * m


def _choose_tm(batch, block_m):
    # Aim for >= 2 grid steps (v7x has 2 TensorCores; no-op on v5e/v6e) while
    # keeping tiles as fat as the cap allows.  Tiles are multiples of 128 when
    # large (lane-dense transposed output, clean DMA), multiples of 8 when tiny.
    tm = min(block_m, max(8, -(-batch // 2)))
    mult = 128 if tm >= 128 else 8
    tm = _round_up(tm, mult)
    return min(tm, _round_up(batch, 8))


def _vmem_budget(tm, k, n, in_itemsize, out_itemsize):
    # Double-buffered x + out (out padded to >=128 lanes in VMEM when N < 128),
    # resident weight/bias, plus slack for compiler scratch.
    budget = (2 * tm * k * in_itemsize
              + 2 * tm * max(n, 128) * out_itemsize
              + k * max(n, 128) * in_itemsize
              + 2 * (1 << 20))
    return int(min(_round_up(budget, 1 << 20), 64 * (1 << 20)))


# --------------------------------------------------------------------------
# Wrappers
# --------------------------------------------------------------------------
def diag_gaussian_forward(x, weight, bias, logstd_bias, *, block_m=2048,
                          min_pallas_batch=1024, cast_x_to_bf16=False):
    """DiagGaussian.forward as (mean, std) with PyTorch layout.

    x:           (B, num_inputs)
    weight:      (num_outputs, num_inputs)   -- PyTorch Linear layout
    bias:        (num_outputs,)
    logstd_bias: (num_outputs,)

    Returns:
      mean: (B, num_outputs)
      std:  (1, num_outputs)  -- x-independent; broadcasts at the consumer.
    """
    x = jnp.asarray(x)
    B, K = x.shape
    N = weight.shape[0]

    wt = jnp.asarray(weight).T                      # (K, N): one-time, static, ~1 KiB
    b = jnp.asarray(bias)
    std = jnp.exp(jnp.asarray(logstd_bias).astype(jnp.float32))
    std = std.reshape(1, N).astype(x.dtype)

    if B < min_pallas_batch:
        # Overhead-bound regime: a custom call + DMA setup dwarfs ~KFLOPs of
        # work; let XLA fuse this matmul into the surrounding graph.
        mean = (x @ wt + b[None, :]).astype(x.dtype)
        return mean, std

    kdt = jnp.bfloat16 if cast_x_to_bf16 else x.dtype
    x_k = x.astype(kdt)
    wt_k = wt.astype(kdt)
    b_row = b.reshape(1, N).astype(jnp.float32)

    TM = _choose_tm(B, block_m)
    grid = (pl.cdiv(B, TM),)

    in_item = jnp.dtype(kdt).itemsize
    out_item = jnp.dtype(x.dtype).itemsize
    cost = pl.CostEstimate(
        flops=2 * B * K * N,
        transcendentals=0,
        bytes_accessed=B * K * in_item + K * N * in_item + N * 4 + B * N * out_item,
    )

    mean = pl.pallas_call(
        _mean_kernel,
        out_shape=jax.ShapeDtypeStruct((B, N), x.dtype),
        grid=grid,
        in_specs=[
            pl.BlockSpec((TM, K), lambda i: (i, 0)),   # x: streamed per batch tile
            pl.BlockSpec((K, N), lambda i: (0, 0)),    # Wt: resident
            pl.BlockSpec((1, N), lambda i: (0, 0)),    # bias: resident
        ],
        out_specs=pl.BlockSpec((TM, N), lambda i: (i, 0)),
        compiler_params=pltpu.CompilerParams(
            dimension_semantics=("parallel",),          # v7x: shard over 2 TCs
            vmem_limit_bytes=_vmem_budget(TM, K, N, in_item, out_item),
        ),
        cost_estimate=cost,
    )(x_k, wt_k, b_row)
    return mean, std


def diag_gaussian_forward_transposed(x, weight, bias, logstd_bias, *, block_m=2048,
                                     min_pallas_batch=1024, cast_x_to_bf16=False):
    """Lane-dense variant: returns (mean_t, std_col) with mean_t of shape
    (num_outputs, B) and std_col of shape (num_outputs, 1).

    The kernel's output last dim is the batch tile (>=128 lanes), so stores are
    unmasked `vst` instead of lane-sparse masked stores.  Consumers that reduce
    over the action dim (log_probs) use `fixed_normal_log_probs_transposed`.
    """
    x = jnp.asarray(x)
    B, K = x.shape
    N = weight.shape[0]

    w = jnp.asarray(weight)                          # (N, K)
    b = jnp.asarray(bias)
    std_col = jnp.exp(jnp.asarray(logstd_bias).astype(jnp.float32))
    std_col = std_col.reshape(N, 1).astype(x.dtype)

    TM = _choose_tm(B, block_m)
    lane_dense_ok = (TM % 128 == 0) or (TM == B)
    if B < min_pallas_batch or not lane_dense_ok:
        mean_t = (w @ x.T + b[:, None]).astype(x.dtype)
        return mean_t, std_col

    kdt = jnp.bfloat16 if cast_x_to_bf16 else x.dtype
    x_k = x.astype(kdt)
    w_k = w.astype(kdt)
    b_col = b.reshape(N, 1).astype(jnp.float32)

    grid = (pl.cdiv(B, TM),)
    in_item = jnp.dtype(kdt).itemsize
    out_item = jnp.dtype(x.dtype).itemsize
    cost = pl.CostEstimate(
        flops=2 * B * K * N,
        transcendentals=0,
        bytes_accessed=B * K * in_item + K * N * in_item + N * 4 + B * N * out_item,
    )

    mean_t = pl.pallas_call(
        _mean_t_kernel,
        out_shape=jax.ShapeDtypeStruct((N, B), x.dtype),
        grid=grid,
        in_specs=[
            pl.BlockSpec((TM, K), lambda i: (i, 0)),   # x: streamed per batch tile
            pl.BlockSpec((N, K), lambda i: (0, 0)),    # W: resident (PyTorch layout)
            pl.BlockSpec((N, 1), lambda i: (0, 0)),    # bias: resident column
        ],
        out_specs=pl.BlockSpec((N, TM), lambda i: (0, i)),
        compiler_params=pltpu.CompilerParams(
            dimension_semantics=("parallel",),
            vmem_limit_bytes=_vmem_budget(TM, K, N, in_item, out_item),
        ),
        cost_estimate=cost,
    )(x_k, w_k, b_col)
    return mean_t, std_col


# --------------------------------------------------------------------------
# FixedNormal helpers (plain JAX glue; the "distribution" is just (mean, std)).
# --------------------------------------------------------------------------
_LOG_2PI = float(jnp.log(2.0 * jnp.pi))


def fixed_normal_log_probs(mean, std, actions):
    # std may be (1, N) -> broadcasts against (B, N) mean/actions.
    var = std * std
    lp = -((actions - mean) ** 2) / (2.0 * var) - jnp.log(std) - 0.5 * _LOG_2PI
    return jnp.sum(lp, axis=-1, keepdims=True)


def fixed_normal_log_probs_transposed(mean_t, std_col, actions_t):
    # mean_t/actions_t: (N, B); std_col: (N, 1).  Returns (B, 1).
    var = std_col * std_col
    lp = -((actions_t - mean_t) ** 2) / (2.0 * var) - jnp.log(std_col) - 0.5 * _LOG_2PI
    return jnp.sum(lp, axis=0)[:, None]


def fixed_normal_mode(mean, std):
    return mean


def _orthogonal_init(key, shape, gain=1.0):
    """Deterministic equivalent of torch.nn.init.orthogonal_ for a 2-D weight."""
    rows, cols = shape
    a = jax.random.normal(key, (rows, cols), dtype=jnp.float32)
    transposed = rows < cols
    if transposed:
        a = a.T
    q, r = jnp.linalg.qr(a)
    d = jnp.sign(jnp.diagonal(r))
    q = q * d[None, :]
    if transposed:
        q = q.T
    return gain * q


# --------------------------------------------------------------------------
# Self-test
# --------------------------------------------------------------------------
if __name__ == "__main__":
    num_inputs = 32
    num_outputs = 8
    batch_small = 8
    batch_large = 256

    key = jax.random.PRNGKey(0)
    kx, kw, kxl, ka = jax.random.split(key, 4)

    # Parameters exactly as DiagGaussian.__init__ builds them:
    weight = _orthogonal_init(kw, (num_outputs, num_inputs))    # fc_mean.weight
    bias = jnp.zeros((num_outputs,), dtype=jnp.float32)         # fc_mean.bias = 0
    logstd_bias = jnp.zeros((num_outputs,), dtype=jnp.float32)  # AddBias bias = 0

    x_s = jax.random.normal(kx, (batch_small, num_inputs), dtype=jnp.float32)
    x_l = jax.random.normal(kxl, (batch_large, num_inputs), dtype=jnp.float32)

    # 1) Small batch, default dispatch -> XLA bypass path.
    mean_s, std_s = diag_gaussian_forward(x_s, weight, bias, logstd_bias)
    # 2) Same small batch, Pallas kernel forced (single grid step).
    mean_sp, _ = diag_gaussian_forward(x_s, weight, bias, logstd_bias,
                                       min_pallas_batch=0)
    # 3) Larger batch, Pallas kernel with a 2-step grid.
    mean_l, std_l = diag_gaussian_forward(x_l, weight, bias, logstd_bias,
                                          min_pallas_batch=0, block_m=128)
    # 4) Lane-dense transposed Pallas path.
    mean_t, std_col = diag_gaussian_forward_transposed(x_l, weight, bias, logstd_bias,
                                                       min_pallas_batch=0, block_m=128)
    jax.block_until_ready((mean_s, mean_sp, mean_l, mean_t, std_s, std_l, std_col))

    # References in plain JAX.
    ref_s = x_s @ weight.T + bias[None, :]
    ref_l = x_l @ weight.T + bias[None, :]
    ref_std = jnp.exp(logstd_bias)[None, :]

    assert mean_s.shape == (batch_small, num_outputs)
    assert mean_l.shape == (batch_large, num_outputs)
    assert mean_t.shape == (num_outputs, batch_large)
    assert std_s.shape == (1, num_outputs)
    assert jnp.allclose(mean_s, ref_s, atol=1e-5, rtol=1e-5)
    assert jnp.allclose(mean_sp, ref_s, atol=1e-5, rtol=1e-5)
    assert jnp.allclose(mean_l, ref_l, atol=1e-5, rtol=1e-5)
    assert jnp.allclose(mean_t, ref_l.T, atol=1e-5, rtol=1e-5)
    assert jnp.allclose(std_s, ref_std, atol=1e-6, rtol=1e-6)
    assert jnp.allclose(std_col, ref_std.T, atol=1e-6, rtol=1e-6)

    # Distribution-level check: broadcast (1, N) std and the transposed layout
    # both reproduce log_probs computed with a fully materialized (B, N) std.
    actions = jax.random.normal(ka, ref_l.shape, dtype=jnp.float32)
    lp = fixed_normal_log_probs(mean_l, std_l, actions)
    lp_full = fixed_normal_log_probs(ref_l, jnp.broadcast_to(ref_std, ref_l.shape),
                                     actions)
    lp_t = fixed_normal_log_probs_transposed(mean_t, std_col, actions.T)
    assert jnp.allclose(lp, lp_full, atol=1e-5, rtol=1e-5)
    assert jnp.allclose(lp_t, lp_full, atol=1e-5, rtol=1e-5)

    print("KERNEL_OK")
</pallas_src>

<mosaic_0001>
module attributes {stable_mosaic.version = 11 : i64} {
  func.func @_mean_kernel(%arg0: i32, %arg1: memref<8x32xf32, #tpu.memory_space<vmem>>, %arg2: memref<32x8xf32, #tpu.memory_space<vmem>>, %arg3: memref<1x8xf32, #tpu.memory_space<vmem>>, %arg4: memref<8x8xf32, #tpu.memory_space<vmem>>) attributes {dimension_semantics = [#tpu.dimension_semantics<parallel>], iteration_bounds = array<i64: 1>, scalar_prefetch = 0 : i64, scratch_operands = 0 : i64, tpu.core_type = #tpu.core_type<tc>, window_params = [{transform_indices = @transform_0, window_bounds = array<i64: 8, 32>}, {pipeline_mode = #tpu.pipeline_mode<synchronous>, transform_indices = @transform_1, window_bounds = array<i64: 32, 8>}, {pipeline_mode = #tpu.pipeline_mode<synchronous>, transform_indices = @transform_2, window_bounds = array<i64: 1, 8>}, {transform_indices = @transform_3, window_bounds = array<i64: 8, 8>}]} {
    %c0 = arith.constant 0 : index
    %c0_0 = arith.constant 0 : index
    %0 = vector.load %arg1[%c0, %c0_0] : memref<8x32xf32, #tpu.memory_space<vmem>>, vector<8x32xf32>
    %c0_1 = arith.constant 0 : index
    %c0_2 = arith.constant 0 : index
    %1 = vector.load %arg2[%c0_1, %c0_2] : memref<32x8xf32, #tpu.memory_space<vmem>>, vector<32x8xf32>
    %cst = arith.constant dense<0.000000e+00> : vector<8x8xf32>
    %2 = tpu.matmul %0, %1, %cst {dimension_numbers = #tpu.dot_dimension_numbers<[1], [0], [0], [1], [0, 0, 1, 1], [], []>} : vector<8x32xf32>, vector<32x8xf32>, vector<8x8xf32> -> vector<8x8xf32>
    %c0_3 = arith.constant 0 : index
    %c0_4 = arith.constant 0 : index
    %3 = vector.load %arg3[%c0_3, %c0_4] : memref<1x8xf32, #tpu.memory_space<vmem>>, vector<1x8xf32>
    %4 = vector.broadcast %3 : vector<1x8xf32> to vector<8x8xf32>
    %5 = arith.addf %2, %4 : vector<8x8xf32>
    %c0_5 = arith.constant 0 : index
    %c0_6 = arith.constant 0 : index
    %6 = vector.load %arg4[%c0_5, %c0_6] : memref<8x8xf32, #tpu.memory_space<vmem>>, vector<8x8xf32>
    tpu.vector_store %arg4[%c0_5, %c0_6], %5 {strides = array<i32>} : memref<8x8xf32, #tpu.memory_space<vmem>>, vector<8x8xf32>,
    return
  }
  func.func @transform_0(%arg0: i32) -> (i32, i32) {
    %c0_i32 = arith.constant 0 : i32
    %c0_i32_0 = arith.constant 0 : i32
    return %arg0, %c0_i32 : i32, i32
  }
  func.func @transform_1(%arg0: i32) -> (i32, i32) {
    %c0_i32 = arith.constant 0 : i32
    %c0_i32_0 = arith.constant 0 : i32
    %c0_i32_1 = arith.constant 0 : i32
    return %c0_i32, %c0_i32_0 : i32, i32
  }
  func.func @transform_2(%arg0: i32) -> (i32, i32) {
    %c0_i32 = arith.constant 0 : i32
    %c0_i32_0 = arith.constant 0 : i32
    %c0_i32_1 = arith.constant 0 : i32
    return %c0_i32, %c0_i32_0 : i32, i32
  }
  func.func @transform_3(%arg0: i32) -> (i32, i32) {
    %c0_i32 = arith.constant 0 : i32
    %c0_i32_0 = arith.constant 0 : i32
    return %arg0, %c0_i32 : i32, i32
  }
}

</mosaic_0001>

<bundles_post_ra>
// kernel: tpu_custom_call.1
= control target key start
LH: loop header
LB: loop body
LE: loop exit
PB: predicated region body
PF: predicated region fallthrough
CT: control target
= control target key end

     0   :  { %v169_v3 = vmov 0.0|0.0   ;;  %vm170_vm0 = vmmov 0   ;;  %v171_v6 = vmov 0.0   ;;  %s223_s0 = inlined_call_operand.vmem [shape: f32[8,32], index: 0, kind: input, shape index: {}]   ;;  %s224_s1 = inlined_call_operand.vmem [shape: f32[32,8], index: 1, kind: input, shape index: {}]   ;;  %s225_s2 = inlined_call_operand.vmem [shape: f32[1,8], index: 2, kind: input, shape index: {}]   ;;  %s226_s3 = inlined_call_operand.hbm [shape: f32[8,8], index: 3, kind: output, shape index: {}]  }
   0x1   :  { %v16_v0 = vld [vmem:[%s224_s1] sm:$0xff]  ;;  %v17_v1 = vld [vmem:[%s224_s1 + $0x8] sm:$0xff]  ;;  %v18_v2 = vld [vmem:[%s224_s1 + $0x10] sm:$0xff]  ;;  %135 = vmatprep.subr.bf16.mxu0 %v169_v3  ;;  %132 = vmatprep.mubr.msk.f32.mxu0 %vm170_vm0, %v171_v6 }
   0x2   :  { %v136_v4 = vpack.c.bf16 %v17_v1, %v16_v0  ;;  %v19_v5 = vld [vmem:[%s224_s1 + $0x18] sm:$0xff] }
   0x3   :  { %8 = vsyncpa [#allocation3], 0  ;;  %v139_v7 = vpack.c.bf16 %v19_v5, %v18_v2  ;;  %v15_v8 = vld [vmem:[%s223_s0] sm:$0xff]  ;;  %vm27_vm1 = vcmask 261120   ;;  %s172_s24 = smov [#allocation2]   ;;  %vm101_vm2 = vcmask 64512  }
   0x4   :  { %137 = vmatpush3.bf16.msra.mxu0 %v136_v4  ;;  %v117_v9 = vld [vmem:[%s225_s2] ss:$0 sm:$0xff]  ;;  %s109_s1 = sshll.u32 %s172_s24, 4  ;;  %s110_s1 = int_to_ptr.vmem [resolvable:$true] %s109_s1 }
   0x5   :  { %138 = vmatprep.subr.bf16.mxu0 %v169_v3  ;;  %s145_s25 = scalar_lea.vmem %s110_s1, 128  ;;  %p150_p1 = scmp.lt.s32.totalorder %s110_s1, %s110_s1 }
   0x6   :  { %p146_p0 = scmp.ne.s32.totalorder %s110_s1, %s145_s25  ;;  %p151_p2 = scmp.lt.s32.totalorder %s145_s25, %s145_s25 }
   0x8   :  { %140 = vmatpush3.bf16.msra.mxu0 %v139_v7  ;;  %p152_p3 = por %p151_p2, %p150_p1 }
   0xa   :  { %p153_p4 = pnand %p152_p3, %p146_p0 }
   0xb   :  { %133 = vmatmul.mubr.msk.f32.vlgmr.msra.gmra.mrb[0].mxu0 %vm27_vm1, %v15_v8 }
  0xde   :  { %v97_v10 = vpop.f32.mrb[0].mxu0 }
  0xdf   :  { %v98_v11 = vadd.f32 %v117_v9, %v97_v10  ;;  %v134_v12 = vpop.f32.mrb[1].mxu0 }
  0xe1   :  { %102 = vst.msk [vmem:[#allocation2] sm:$0xff] %vm101_vm2, %v98_v11 }
  0xe2   :  { %156 = shalt.err (!%p153_p4)
}
  0xe3   :  { %s157_s27 = scalar_lea.hbm %s226_s3, 128 }
  0xe4   :  { %p158_p5 = scmp.ne.s32.totalorder %s226_s3, %s157_s27  ;;  %p161_p6 = scmp.lt.u32.totalorder %s157_s27, %s226_s3 }
  0xe6   :  { %p163_p7 = pnand %p161_p6, %p158_p5 }
  0xe8   :  { %166 = shalt.err (!%p163_p7)
}
  0xe9   :  { %112 = dma.vmem_to_hbm [thread:$0]  %s110_s1, 128, %s226_s3, [#allocation3]  }
  0xea   :  { %167 = dma.done.wait [#allocation3], 128  }
  0xeb   :  { %168 = vsyncadd [#allocation3], 4294967168 }
  0xec   :  { %116 = vsyncpa [#allocation3], 1 }

</bundles_post_ra>
